<compile_context>
chip_gen: v7x
topology: tpu7x:2x2x1
jax: 0.10.0
libtpu: 0.0.40
codegen_flags: <defaults>
</compile_context>

<pallas_src>
import functools

import jax
import jax.numpy as jnp
from jax.experimental import pallas as pl
from jax.experimental.pallas import tpu as pltpu


K = 3            # conv kernel size of the synthetic base model
OUT_LANES = 128  # lane-dense output slab width


def _round_up(x, m):
    return ((x + m - 1) // m) * m


# ------------------------------ fused kernel ------------------------------- #

def _disc_kernel(patch_ref, wconv_ref, bconv_ref, w_heads_ref, b_heads_ref,
                 w_out_ref, b_out_ref, out_ref, feats_ref, *, num_class, hw):
    # patch_ref  : (HW, CKK)        im2col patches of batch b (this grid step)
    # wconv_ref  : (CKK, F)         conv weight
    # bconv_ref  : (1, F)           conv bias
    # w_heads_ref: (F, HEADW_PAD)   [classifier W | disc hidden W | 0-pad]
    # b_heads_ref: (1, HEADW_PAD)   [b_cls | b_d1 | 0]
    # w_out_ref  : (HEADW_PAD, 128) [I_NC -> logit cols | w_d2 -> disc col]
    # b_out_ref  : (1, 128)         b_d2 at the disc column
    # out_ref    : (B, 128)         lane-dense slab [logits | disc | 0...]
    # feats_ref  : (B, F)           VMEM scratch holding pooled features
    b = pl.program_id(0)

    # conv as one matmul over this batch's HW patch rows, bias add, ReLU
    conv = (jnp.dot(patch_ref[...], wconv_ref[...],
                    preferred_element_type=jnp.float32)
            + bconv_ref[...])                                       # (HW, F)
    conv = jnp.maximum(conv, 0.0)

    # global average pool as a (1, HW) x (HW, F) MXU matmul
    pool_row = jnp.full((1, hw), 1.0 / hw, dtype=jnp.float32)
    feats_row = jnp.dot(pool_row, conv,
                        preferred_element_type=jnp.float32)         # (1, F)

    # write this batch's feats row into the resident scratch (masked select
    # write: no dynamic sublane-offset stores needed)
    row_ids = jax.lax.broadcasted_iota(jnp.int32, feats_ref.shape, 0)
    feats_ref[...] = jnp.where(row_ids == b, feats_row, feats_ref[...])

    # fused heads + lane-dense output store, once, on the last grid step
    @pl.when(b == pl.num_programs(0) - 1)
    def _():
        feats = feats_ref[...]                                      # (B, F)
        head = (jnp.dot(feats, w_heads_ref[...],
                        preferred_element_type=jnp.float32)
                + b_heads_ref[...])                                 # (B, NC+F)
        # ReLU only the discriminator-hidden columns (>= num_class); the
        # classifier columns pass through (identity-projected below).
        col = jax.lax.broadcasted_iota(jnp.int32, head.shape, 1)
        head = jnp.where(col >= num_class, jnp.maximum(head, 0.0), head)
        out_ref[...] = (jnp.dot(head, w_out_ref[...],
                                preferred_element_type=jnp.float32)
                        + b_out_ref[...])


# ------------------------------ param prep --------------------------------- #

def init_params(key, in_channels, num_features, num_class):
    ks = jax.random.split(key, 8)
    s = 0.05
    return {
        # base model conv (PyTorch layout: (F, C, K, K))
        "w_conv": s * jax.random.normal(ks[0], (num_features, in_channels, K, K), jnp.float32),
        "b_conv": s * jax.random.normal(ks[1], (num_features,), jnp.float32),
        # classifier Linear(F -> num_class), PyTorch layout (out, in)
        "w_cls": s * jax.random.normal(ks[2], (num_class, num_features), jnp.float32),
        "b_cls": s * jax.random.normal(ks[3], (num_class,), jnp.float32),
        # discriminator Linear(F -> F)
        "w_d1": s * jax.random.normal(ks[4], (num_features, num_features), jnp.float32),
        "b_d1": s * jax.random.normal(ks[5], (num_features,), jnp.float32),
        # discriminator Linear(F -> 1)
        "w_d2": s * jax.random.normal(ks[6], (1, num_features), jnp.float32),
        "b_d2": s * jax.random.normal(ks[7], (1,), jnp.float32),
    }


def prepare_params(params):
    """One-time weight-slab construction (hoisted out of the forward path)."""
    F_, C = params["w_conv"].shape[0], params["w_conv"].shape[1]
    NC = params["w_cls"].shape[0]
    CKK = C * K * K
    HEADW = NC + F_
    HEADW_PAD = _round_up(HEADW, 8)

    # conv weight as a (CKK, F) slab, channel-major (c, ki, kj) row order
    wconv = params["w_conv"].reshape(F_, CKK).T
    bconv = params["b_conv"].reshape(1, F_)

    # fused head weights: [classifier | discriminator hidden | pad]
    w_heads = jnp.zeros((F_, HEADW_PAD), jnp.float32)
    w_heads = w_heads.at[:, :NC].set(params["w_cls"].T)
    w_heads = w_heads.at[:, NC:NC + F_].set(params["w_d1"].T)
    b_heads = jnp.zeros((1, HEADW_PAD), jnp.float32)
    b_heads = b_heads.at[0, :NC].set(params["b_cls"])
    b_heads = b_heads.at[0, NC:NC + F_].set(params["b_d1"])

    # final projection into the lane-dense output slab:
    #   cols [0, NC)  <- identity of the classifier part (logits)
    #   col  NC       <- w_d2 applied to the ReLU'd discriminator hidden
    w_out = jnp.zeros((HEADW_PAD, OUT_LANES), jnp.float32)
    w_out = w_out.at[:NC, :NC].set(jnp.eye(NC, dtype=jnp.float32))
    w_out = w_out.at[NC:NC + F_, NC].set(params["w_d2"][0])
    b_out = jnp.zeros((1, OUT_LANES), jnp.float32)
    b_out = b_out.at[0, NC].set(params["b_d2"][0])

    return {"wconv": wconv, "bconv": bconv,
            "w_heads": w_heads, "b_heads": b_heads,
            "w_out": w_out, "b_out": b_out}


# ------------------------------ forward ------------------------------------ #

@functools.partial(jax.jit, static_argnames=("num_class",))
def discriminator_forward(x, prepped, *, num_class):
    B, C, H, W = x.shape
    CKK, F_ = prepped["wconv"].shape
    HEADW_PAD = prepped["w_heads"].shape[1]
    NC = num_class
    HW = H * W
    BHW = B * HW

    # ---- im2col glue: (B*HW, CKK), channel-major (c, ki, kj) column order ----
    # TODO(synk): at realistic H/W/B form patches inside the kernel (halo
    # BlockSpec + K*K shifted accumulating dots) to avoid 9x HBM traffic.
    xp = jnp.pad(x, ((0, 0), (0, 0), (1, 1), (1, 1)))
    cols = [xp[:, :, ki:ki + H, kj:kj + W] for ki in range(K) for kj in range(K)]
    patches = jnp.stack(cols, axis=2)                       # (B, C, K*K, H, W)
    patches = patches.transpose(0, 3, 4, 1, 2).reshape(BHW, CKK)

    kernel = functools.partial(_disc_kernel, num_class=NC, hw=HW)
    out_slab = pl.pallas_call(
        kernel,
        out_shape=jax.ShapeDtypeStruct((B, OUT_LANES), jnp.float32),
        grid=(B,),
        in_specs=[
            pl.BlockSpec((HW, CKK), lambda b: (b, 0)),       # per-batch patches
            pl.BlockSpec((CKK, F_), lambda b: (0, 0)),
            pl.BlockSpec((1, F_), lambda b: (0, 0)),
            pl.BlockSpec((F_, HEADW_PAD), lambda b: (0, 0)),
            pl.BlockSpec((1, HEADW_PAD), lambda b: (0, 0)),
            pl.BlockSpec((HEADW_PAD, OUT_LANES), lambda b: (0, 0)),
            pl.BlockSpec((1, OUT_LANES), lambda b: (0, 0)),
        ],
        out_specs=pl.BlockSpec((B, OUT_LANES), lambda b: (0, 0)),
        scratch_shapes=[pltpu.VMEM((B, F_), jnp.float32)],
        compiler_params=pltpu.CompilerParams(
            dimension_semantics=("arbitrary",)),
    )(patches, prepped["wconv"], prepped["bconv"], prepped["w_heads"],
      prepped["b_heads"], prepped["w_out"], prepped["b_out"])

    logits = out_slab[:, :NC]
    disc = out_slab[:, NC]          # == discriminator(feats).view(-1)
    return logits, disc


# ------------------------------- reference --------------------------------- #

def _reference_forward(x, params):
    """Pure-JAX reference (same math) used only for a sanity check."""
    B, C, H, W = x.shape
    F_ = params["w_conv"].shape[0]
    conv = jax.lax.conv_general_dilated(
        x, params["w_conv"], window_strides=(1, 1), padding="SAME",
        dimension_numbers=("NCHW", "OIHW", "NCHW"))
    conv = conv + params["b_conv"].reshape(1, F_, 1, 1)
    conv = jnp.maximum(conv, 0.0)
    feats = conv.mean(axis=(2, 3))                          # (B, F)
    logits = feats @ params["w_cls"].T + params["b_cls"]
    h = jnp.maximum(feats @ params["w_d1"].T + params["b_d1"], 0.0)
    disc = (h @ params["w_d2"].T + params["b_d2"]).reshape(-1)
    return logits, disc


# --------------------------------- main ------------------------------------ #

if __name__ == "__main__":
    key = jax.random.PRNGKey(0)
    k_x, k_p = jax.random.split(key)

    B, C, H, W = 2, 4, 16, 16
    num_features, num_class = 32, 8

    x = jax.random.normal(k_x, (B, C, H, W), jnp.float32)
    params = init_params(k_p, C, num_features, num_class)

    prepped = prepare_params(params)        # one-time weight slab prep
    jax.block_until_ready(prepped)

    logits, disc = discriminator_forward(x, prepped, num_class=num_class)
    jax.block_until_ready((logits, disc))

    ref_logits, ref_disc = _reference_forward(x, params)
    assert logits.shape == (B, num_class) and disc.shape == (B,)
    assert jnp.allclose(logits, ref_logits, atol=1e-4, rtol=1e-4)
    assert jnp.allclose(disc, ref_disc, atol=1e-4, rtol=1e-4)

    print("KERNEL_OK")
</pallas_src>

<mosaic_0001>
module attributes {stable_mosaic.version = 11 : i64} {
  func.func @_disc_kernel(%arg0: i32, %arg1: memref<256x36xf32, #tpu.memory_space<vmem>>, %arg2: memref<36x32xf32, #tpu.memory_space<vmem>>, %arg3: memref<1x32xf32, #tpu.memory_space<vmem>>, %arg4: memref<32x40xf32, #tpu.memory_space<vmem>>, %arg5: memref<1x40xf32, #tpu.memory_space<vmem>>, %arg6: memref<40x128xf32, #tpu.memory_space<vmem>>, %arg7: memref<1x128xf32, #tpu.memory_space<vmem>>, %arg8: memref<2x128xf32, #tpu.memory_space<vmem>>, %arg9: memref<2x32xf32, #tpu.memory_space<vmem>>) attributes {dimension_semantics = [#tpu.dimension_semantics<arbitrary>], iteration_bounds = array<i64: 2>, scalar_prefetch = 0 : i64, scratch_operands = 1 : i64, tpu.core_type = #tpu.core_type<tc>, window_params = [{transform_indices = @transform_0, window_bounds = array<i64: 256, 36>}, {pipeline_mode = #tpu.pipeline_mode<synchronous>, transform_indices = @transform_1, window_bounds = array<i64: 36, 32>}, {pipeline_mode = #tpu.pipeline_mode<synchronous>, transform_indices = @transform_2, window_bounds = array<i64: 1, 32>}, {pipeline_mode = #tpu.pipeline_mode<synchronous>, transform_indices = @transform_3, window_bounds = array<i64: 32, 40>}, {pipeline_mode = #tpu.pipeline_mode<synchronous>, transform_indices = @transform_4, window_bounds = array<i64: 1, 40>}, {pipeline_mode = #tpu.pipeline_mode<synchronous>, transform_indices = @transform_5, window_bounds = array<i64: 40, 128>}, {pipeline_mode = #tpu.pipeline_mode<synchronous>, transform_indices = @transform_6, window_bounds = array<i64: 1, 128>}, {pipeline_mode = #tpu.pipeline_mode<synchronous>, transform_indices = @transform_7, window_bounds = array<i64: 2, 128>}]} {
    %c0 = arith.constant 0 : index
    %c0_0 = arith.constant 0 : index
    %0 = vector.load %arg1[%c0, %c0_0] : memref<256x36xf32, #tpu.memory_space<vmem>>, vector<256x36xf32>
    %c0_1 = arith.constant 0 : index
    %c0_2 = arith.constant 0 : index
    %1 = vector.load %arg2[%c0_1, %c0_2] : memref<36x32xf32, #tpu.memory_space<vmem>>, vector<36x32xf32>
    %cst = arith.constant dense<0.000000e+00> : vector<256x32xf32>
    %2 = tpu.matmul %0, %1, %cst {dimension_numbers = #tpu.dot_dimension_numbers<[1], [0], [0], [1], [0, 0, 1, 1], [], []>} : vector<256x36xf32>, vector<36x32xf32>, vector<256x32xf32> -> vector<256x32xf32>
    %c0_3 = arith.constant 0 : index
    %c0_4 = arith.constant 0 : index
    %3 = vector.load %arg3[%c0_3, %c0_4] : memref<1x32xf32, #tpu.memory_space<vmem>>, vector<1x32xf32>
    %4 = vector.broadcast %3 : vector<1x32xf32> to vector<256x32xf32>
    %5 = arith.addf %2, %4 : vector<256x32xf32>
    %cst_5 = arith.constant 0.000000e+00 : f32
    %6 = vector.broadcast %cst_5 : f32 to vector<256x32xf32>
    %7 = arith.maximumf %5, %6 : vector<256x32xf32>
    %cst_6 = arith.constant 3.906250e-03 : f32
    %8 = vector.broadcast %cst_6 : f32 to vector<1x256xf32>
    %cst_7 = arith.constant dense<0.000000e+00> : vector<1x32xf32>
    %9 = tpu.matmul %8, %7, %cst_7 {dimension_numbers = #tpu.dot_dimension_numbers<[1], [0], [0], [1], [0, 0, 1, 1], [], []>} : vector<1x256xf32>, vector<256x32xf32>, vector<1x32xf32> -> vector<1x32xf32>
    %10 = tpu.iota {dimensions = array<i32: 0>} : vector<2x32xi32>
    %11 = vector.broadcast %arg0 : i32 to vector<2x32xi32>
    %12 = arith.cmpi eq, %10, %11 : vector<2x32xi32>
    %c0_8 = arith.constant 0 : index
    %c0_9 = arith.constant 0 : index
    %13 = vector.load %arg9[%c0_8, %c0_9] : memref<2x32xf32, #tpu.memory_space<vmem>>, vector<2x32xf32>
    %14 = vector.shape_cast %9 : vector<1x32xf32> to vector<1x32xf32>
    %15 = vector.broadcast %14 : vector<1x32xf32> to vector<2x32xf32>
    %16 = arith.select %12, %15, %13 : vector<2x32xi1>, vector<2x32xf32>
    %c0_10 = arith.constant 0 : index
    %c0_11 = arith.constant 0 : index
    %17 = vector.load %arg9[%c0_10, %c0_11] : memref<2x32xf32, #tpu.memory_space<vmem>>, vector<2x32xf32>
    tpu.vector_store %arg9[%c0_10, %c0_11], %16 {strides = array<i32>} : memref<2x32xf32, #tpu.memory_space<vmem>>, vector<2x32xf32>,
    %c1_i32 = arith.constant 1 : i32
    %18 = arith.cmpi eq, %arg0, %c1_i32 : i32
    %19 = arith.extui %18 : i1 to i32
    %c0_i32 = arith.constant 0 : i32
    %20 = arith.cmpi ne, %19, %c0_i32 : i32
    scf.if %20 {
      %c0_12 = arith.constant 0 : index
      %c0_13 = arith.constant 0 : index
      %21 = vector.load %arg9[%c0_12, %c0_13] : memref<2x32xf32, #tpu.memory_space<vmem>>, vector<2x32xf32>
      %c0_14 = arith.constant 0 : index
      %c0_15 = arith.constant 0 : index
      %22 = vector.load %arg4[%c0_14, %c0_15] : memref<32x40xf32, #tpu.memory_space<vmem>>, vector<32x40xf32>
      %cst_16 = arith.constant dense<0.000000e+00> : vector<2x40xf32>
      %23 = tpu.matmul %21, %22, %cst_16 {dimension_numbers = #tpu.dot_dimension_numbers<[1], [0], [0], [1], [0, 0, 1, 1], [], []>} : vector<2x32xf32>, vector<32x40xf32>, vector<2x40xf32> -> vector<2x40xf32>
      %c0_17 = arith.constant 0 : index
      %c0_18 = arith.constant 0 : index
      %24 = vector.load %arg5[%c0_17, %c0_18] : memref<1x40xf32, #tpu.memory_space<vmem>>, vector<1x40xf32>
      %25 = vector.broadcast %24 : vector<1x40xf32> to vector<2x40xf32>
      %26 = arith.addf %23, %25 : vector<2x40xf32>
      %27 = tpu.iota {dimensions = array<i32: 1>} : vector<2x40xi32>
      %c8_i32 = arith.constant 8 : i32
      %28 = vector.broadcast %c8_i32 : i32 to vector<2x40xi32>
      %29 = arith.cmpi sge, %27, %28 : vector<2x40xi32>
      %cst_19 = arith.constant 0.000000e+00 : f32
      %30 = vector.broadcast %cst_19 : f32 to vector<2x40xf32>
      %31 = arith.maximumf %26, %30 : vector<2x40xf32>
      %32 = arith.select %29, %31, %26 : vector<2x40xi1>, vector<2x40xf32>
      %c0_20 = arith.constant 0 : index
      %c0_21 = arith.constant 0 : index
      %33 = vector.load %arg6[%c0_20, %c0_21] : memref<40x128xf32, #tpu.memory_space<vmem>>, vector<40x128xf32>
      %cst_22 = arith.constant dense<0.000000e+00> : vector<2x128xf32>
      %34 = tpu.matmul %32, %33, %cst_22 {dimension_numbers = #tpu.dot_dimension_numbers<[1], [0], [0], [1], [0, 0, 1, 1], [], []>} : vector<2x40xf32>, vector<40x128xf32>, vector<2x128xf32> -> vector<2x128xf32>
      %c0_23 = arith.constant 0 : index
      %c0_24 = arith.constant 0 : index
      %35 = vector.load %arg7[%c0_23, %c0_24] : memref<1x128xf32, #tpu.memory_space<vmem>>, vector<1x128xf32>
      %36 = vector.broadcast %35 : vector<1x128xf32> to vector<2x128xf32>
      %37 = arith.addf %34, %36 : vector<2x128xf32>
      %c0_25 = arith.constant 0 : index
      %c0_26 = arith.constant 0 : index
      %38 = vector.load %arg8[%c0_25, %c0_26] : memref<2x128xf32, #tpu.memory_space<vmem>>, vector<2x128xf32>
      tpu.vector_store %arg8[%c0_25, %c0_26], %37 {strides = array<i32>} : memref<2x128xf32, #tpu.memory_space<vmem>>, vector<2x128xf32>,
    } else {
    }
    return
  }
  func.func @transform_0(%arg0: i32) -> (i32, i32) {
    %c0_i32 = arith.constant 0 : i32
    %c0_i32_0 = arith.constant 0 : i32
    return %arg0, %c0_i32 : i32, i32
  }
  func.func @transform_1(%arg0: i32) -> (i32, i32) {
    %c0_i32 = arith.constant 0 : i32
    %c0_i32_0 = arith.constant 0 : i32
    %c0_i32_1 = arith.constant 0 : i32
    return %c0_i32, %c0_i32_0 : i32, i32
  }
  func.func @transform_2(%arg0: i32) -> (i32, i32) {
    %c0_i32 = arith.constant 0 : i32
    %c0_i32_0 = arith.constant 0 : i32
    %c0_i32_1 = arith.constant 0 : i32
    return %c0_i32, %c0_i32_0 : i32, i32
  }
  func.func @transform_3(%arg0: i32) -> (i32, i32) {
    %c0_i32 = arith.constant 0 : i32
    %c0_i32_0 = arith.constant 0 : i32
    %c0_i32_1 = arith.constant 0 : i32
    return %c0_i32, %c0_i32_0 : i32, i32
  }
  func.func @transform_4(%arg0: i32) -> (i32, i32) {
    %c0_i32 = arith.constant 0 : i32
    %c0_i32_0 = arith.constant 0 : i32
    %c0_i32_1 = arith.constant 0 : i32
    return %c0_i32, %c0_i32_0 : i32, i32
  }
  func.func @transform_5(%arg0: i32) -> (i32, i32) {
    %c0_i32 = arith.constant 0 : i32
    %c0_i32_0 = arith.constant 0 : i32
    %c0_i32_1 = arith.constant 0 : i32
    return %c0_i32, %c0_i32_0 : i32, i32
  }
  func.func @transform_6(%arg0: i32) -> (i32, i32) {
    %c0_i32 = arith.constant 0 : i32
    %c0_i32_0 = arith.constant 0 : i32
    %c0_i32_1 = arith.constant 0 : i32
    return %c0_i32, %c0_i32_0 : i32, i32
  }
  func.func @transform_7(%arg0: i32) -> (i32, i32) {
    %c0_i32 = arith.constant 0 : i32
    %c0_i32_0 = arith.constant 0 : i32
    %c0_i32_1 = arith.constant 0 : i32
    return %c0_i32, %c0_i32_0 : i32, i32
  }
}

</mosaic_0001>

<bundles_post_ra>
// kernel: discriminator_forward.1
= control target key start
LH: loop header
LB: loop body
LE: loop exit
PB: predicated region body
PF: predicated region fallthrough
CT: control target
= control target key end

     0   :  { %s1288_s24 = smov 0   ;;  %s1484_s0 = inlined_call_operand.vmem [shape: f32[512,36], index: 0, kind: input, shape index: {}]   ;;  %s1485_s1 = inlined_call_operand.vmem [shape: f32[36,32], index: 1, kind: input, shape index: {}]   ;;  %s1486_s2 = inlined_call_operand.vmem [shape: f32[1,32], index: 2, kind: input, shape index: {}]   ;;  %s1487_s3 = inlined_call_operand.vmem [shape: f32[32,40], index: 3, kind: input, shape index: {}]   ;;  %s1488_s4 = inlined_call_operand.vmem [shape: f32[1,40], index: 4, kind: input, shape index: {}]   ;;  %s1489_s5 = inlined_call_operand.vmem [shape: f32[40,128], index: 5, kind: input, shape index: {}]   ;;  %s1490_s6 = inlined_call_operand.vmem [shape: f32[1,128], index: 6, kind: input, shape index: {}]   ;;  %s1491_s7 = inlined_call_operand.vmem [shape: f32[2,128], index: 7, kind: output, shape index: {}]  }
   0x1 LB: > { %s1294_s25 = sadd.s32 4294967295, %s1242_s24   ;;  %p963_p0 = scmp.ge.s32.totalorder %s1242_s24, 1  ;;  %s1242_s24 = sphi %s1288_s24, %s17_s24  }
   0x2   : > { %p233_p1 = scmp.lt.s32.totalorder %s1242_s24, 3 }
   0x4   : > { %p234_p2 = pnand %p963_p0, %p233_p1 }
   0x5   : > { %v298_v0 = vld [vmem:[%s1485_s1] sm:$0xff] (!%p234_p2)  ;;  %v299_v1 = vld [vmem:[%s1485_s1 + $0x8] sm:$0xff] (!%p234_p2)  ;;  %v300_v2 = vld [vmem:[%s1485_s1 + $0x10] sm:$0xff] (!%p234_p2)  ;;  %s964_s9 = sshll.u32 (!%p234_p2), %s1294_s25, 5  ;;  %vm310_vm0 = vcmask (!%p234_p2), 293888   ;;  %vm407_vm1 = vcmask (!%p234_p2), 1043456  }
   0x6   : > { %237 = sbr.rel (%p234_p2) target bundleno = 959 (0x3bf), region = 48  ;;  %v1172_v3 = vpack.c.bf16 (!%p234_p2), %v299_v1, %v298_v0  ;;  %v301_v4 = vld [vmem:[%s1485_s1 + $0x18] sm:$0xff] (!%p234_p2)  ;;  %p261_p3 = scmp.lt.s32.totalorder (!%p234_p2), %s964_s9, 63  ;;  %v302_v6 = vld [vmem:[%s1485_s1 + $0x20] sm:$0xf] (!%p234_p2)  ;;  %v1244_v39 = vmov (!%p234_p2), 0.00390625  }
   0x7   : > { %v1176_v5 = vpack.c.bf16 (!%p234_p2), %v301_v4, %v300_v2  ;;  %732 = vmatprep.mubr.f32.mxu1 (!%p234_p2), %v1244_v39  ;;  %v1387_v40 = vld [vmem:[%s1486_s2] ss:$0 sm:$0xff] (!%p234_p2)  ;;  %vm748_vm3 = vcmask (!%p234_p2), 254976   ;;  %p1000_p4 = scmp.ne.s32.totalorder (!%p234_p2), %s1294_s25, 1 }
   0x8   : > { %1173 = vmatprep.subr.bf16.mxu0 (!%p234_p2), %v1172_v3 }
   0x9   : > { %1175 = vmatpush3.bf16.msra.mxu0 (!%p234_p2), %v1172_v3 }
   0xa   : > { %1177 = vmatprep.subr.bf16.mxu0 (!%p234_p2), %v1176_v5 }
   0xd   : > { %s1493_s9 = smov (!%p261_p3, %s964_s9), 63  ;;  %1179 = vmatpush3.bf16.msra.mxu0 %v1176_v5  ;;  %vm1246_vm4 = vmmov (!%p1000_p4), 0   ;;  %vm766_vm5 = vcmask (!%p1000_p4), 261120   ;;  %vm857_vm7 = vcmask (!%p1000_p4), 326656  }
   0xe   : > { %s965_s12 = sshll.u32 %s1493_s9, 3  ;;  %1098 = vmatprep.subr.msk.mxu0 %vm407_vm1, %v302_v6 }
   0xf   : > { %s1317_s17 = scalar_lea.vmem %s1484_s0, %s965_s12 }
  0x10   : > { %v266_v7 = vld [vmem:[%s1317_s17] sm:$0xff]  ;;  %v267_v8 = vld [vmem:[%s1317_s17 + $0x8] sm:$0xff]  ;;  %v268_v9 = vld [vmem:[%s1317_s17 + $0x10] sm:$0xff] }
  0x11   : > { %1100 = vmatprep.mubr.msk.f32.mxu0 %vm310_vm0, %v266_v7  ;;  %1099 = vmatpush3.msk.msra.mxu0 %vm407_vm1, %v302_v6  ;;  %v269_v10 = vld [vmem:[%s1317_s17 + $0x18] sm:$0xff]  ;;  %v270_v11 = vld [vmem:[%s1317_s17 + $0x20] sm:$0xff]  ;;  %v271_v12 = vld [vmem:[%s1317_s17 + $0x28] sm:$0xff] }
  0x12   : > { %1101 = vmatmul.mubr.msk.f32.vlgmr.msra.gmra.mrb[0].mxu0 %vm310_vm0, %v267_v8  ;;  %v272_v13 = vld [vmem:[%s1317_s17 + $0x30] sm:$0xff]  ;;  %v273_v14 = vld [vmem:[%s1317_s17 + $0x38] sm:$0xff]  ;;  %v274_v15 = vld [vmem:[%s1317_s17 + $0x40] sm:$0xff] }
  0x13   : > { %1103 = vmatprep.mubr.msk.f32.mxu0 %vm310_vm0, %v268_v9  ;;  %v275_v16 = vld [vmem:[%s1317_s17 + $0x48] sm:$0xff]  ;;  %v276_v17 = vld [vmem:[%s1317_s17 + $0x50] sm:$0xff]  ;;  %v277_v18 = vld [vmem:[%s1317_s17 + $0x58] sm:$0xff] }
  0x14   : > { %v278_v19 = vld [vmem:[%s1317_s17 + $0x60] sm:$0xff]  ;;  %v279_v20 = vld [vmem:[%s1317_s17 + $0x68] sm:$0xff]  ;;  %v280_v21 = vld [vmem:[%s1317_s17 + $0x70] sm:$0xff] }
  0x15   : > { %v281_v22 = vld [vmem:[%s1317_s17 + $0x78] sm:$0xff]  ;;  %v282_v23 = vld [vmem:[%s1317_s17 + $0x80] sm:$0xff]  ;;  %v283_v24 = vld [vmem:[%s1317_s17 + $0x88] sm:$0xff] }
  0x16   : > { %1104 = vmatmul.mubr.msk.f32.gmra.mrb[2].mxu0 %vm310_vm0, %v269_v10  ;;  %v284_v25 = vld [vmem:[%s1317_s17 + $0x90] sm:$0xff]  ;;  %v285_v26 = vld [vmem:[%s1317_s17 + $0x98] sm:$0xff]  ;;  %v286_v27 = vld [vmem:[%s1317_s17 + $0xa0] sm:$0xff] }
  0x17   : > { %1106 = vmatprep.mubr.msk.f32.mxu0 %vm310_vm0, %v270_v11  ;;  %v287_v28 = vld [vmem:[%s1317_s17 + $0xa8] sm:$0xff]  ;;  %v288_v29 = vld [vmem:[%s1317_s17 + $0xb0] sm:$0xff]  ;;  %v289_v30 = vld [vmem:[%s1317_s17 + $0xb8] sm:$0xff] }
  0x18   : > { %v290_v31 = vld [vmem:[%s1317_s17 + $0xc0] sm:$0xff]  ;;  %v291_v32 = vld [vmem:[%s1317_s17 + $0xc8] sm:$0xff]  ;;  %v292_v33 = vld [vmem:[%s1317_s17 + $0xd0] sm:$0xff] }
  0x19   : > { %v293_v34 = vld [vmem:[%s1317_s17 + $0xd8] sm:$0xff]  ;;  %v294_v35 = vld [vmem:[%s1317_s17 + $0xe0] sm:$0xff]  ;;  %v295_v36 = vld [vmem:[%s1317_s17 + $0xe8] sm:$0xff] }
  0x1a   : > { %1107 = vmatmul.mubr.msk.f32.gmra.mrb[4].mxu0 %vm310_vm0, %v271_v12  ;;  %v296_v37 = vld [vmem:[%s1317_s17 + $0xf0] sm:$0xff]  ;;  %v297_v38 = vld [vmem:[%s1317_s17 + $0xf8] sm:$0xff] }
  0x1b   : > { %1109 = vmatprep.mubr.msk.f32.mxu0 %vm310_vm0, %v272_v13 }
  0x1e   : > { %1110 = vmatmul.mubr.msk.f32.gmra.mrb[6].mxu0 %vm310_vm0, %v273_v14 }
  0x1f   : > { %1112 = vmatprep.mubr.msk.f32.mxu0 %vm310_vm0, %v274_v15 }
  0x22   : > { %1113 = vmatmul.mubr.msk.f32.gmra.mrb[8].mxu0 %vm310_vm0, %v275_v16 }
  0x23   : > { %1115 = vmatprep.mubr.msk.f32.mxu0 %vm310_vm0, %v276_v17 }
  0x26   : > { %1116 = vmatmul.mubr.msk.f32.gmra.mrb[10].mxu0 %vm310_vm0, %v277_v18 }
  0x27   : > { %1118 = vmatprep.mubr.msk.f32.mxu0 %vm310_vm0, %v278_v19 }
  0x2a   : > { %1119 = vmatmul.mubr.msk.f32.gmra.mrb[12].mxu0 %vm310_vm0, %v279_v20 }
  0x2b   : > { %1121 = vmatprep.mubr.msk.f32.mxu0 %vm310_vm0, %v280_v21 }
  0x2e   : > { %1122 = vmatmul.mubr.msk.f32.gmra.mrb[14].mxu0 %vm310_vm0, %v281_v22 }
  0x2f   : > { %1124 = vmatprep.mubr.msk.f32.mxu0 %vm310_vm0, %v282_v23 }
  0x32   : > { %1125 = vmatmul.mubr.msk.f32.gmra.mrb[16].mxu0 %vm310_vm0, %v283_v24 }
  0x33   : > { %1127 = vmatprep.mubr.msk.f32.mxu0 %vm310_vm0, %v284_v25 }
  0x36   : > { %1128 = vmatmul.mubr.msk.f32.gmra.mrb[18].mxu0 %vm310_vm0, %v285_v26 }
  0x37   : > { %1130 = vmatprep.mubr.msk.f32.mxu0 %vm310_vm0, %v286_v27 }
  0x3a   : > { %1131 = vmatmul.mubr.msk.f32.gmra.mrb[20].mxu0 %vm310_vm0, %v287_v28 }
  0x3b   : > { %1133 = vmatprep.mubr.msk.f32.mxu0 %vm310_vm0, %v288_v29 }
  0x3e   : > { %1134 = vmatmul.mubr.msk.f32.gmra.mrb[22].mxu0 %vm310_vm0, %v289_v30 }
  0x3f   : > { %1136 = vmatprep.mubr.msk.f32.mxu0 %vm310_vm0, %v290_v31 }
  0x42   : > { %1137 = vmatmul.mubr.msk.f32.gmra.mrb[24].mxu0 %vm310_vm0, %v291_v32 }
  0x43   : > { %1139 = vmatprep.mubr.msk.f32.mxu0 %vm310_vm0, %v292_v33 }
  0x46   : > { %1140 = vmatmul.mubr.msk.f32.gmra.mrb[26].mxu0 %vm310_vm0, %v293_v34 }
  0x47   : > { %1142 = vmatprep.mubr.msk.f32.mxu0 %vm310_vm0, %v294_v35 }
  0x4a   : > { %1143 = vmatmul.mubr.msk.f32.gmra.mrb[28].mxu0 %vm310_vm0, %v295_v36 }
  0x4b   : > { %1145 = vmatprep.mubr.msk.f32.mxu0 %vm310_vm0, %v296_v37 }
  0x4e   : > { %1146 = vmatmul.mubr.msk.f32.gmra.mrb[30].mxu0 %vm310_vm0, %v297_v38 }
  0xe5   : > { %v1102_v41 = vpop.f32.mrb[0].mxu0 }
  0xe6   : > { %v483_v42 = vadd.f32 %v1102_v41, %v1387_v40  ;;  %v477_v43 = vpop.f32.mrb[1].mxu0 }
  0xe7   : > { %v478_v44 = vadd.f32 %v1387_v40, %v477_v43 }
  0xe8   : > { %v637_v45 = vmax.f32 %v483_v42, 0.0 }
  0xe9   : > { %v636_v46 = vmax.f32 %v478_v44, 0.0  ;;  %v1105_v47 = vpop.f32.mrb[2].mxu0 }
  0xea   : > { %v493_v48 = vadd.f32 %v1105_v47, %v1387_v40  ;;  %v487_v49 = vpop.f32.mrb[3].mxu0 }
  0xeb   : > { %v488_v50 = vadd.f32 %v1387_v40, %v487_v49  ;;  %v1182_v51 = vpack.c.bf16 %v637_v45, %v636_v46 }
  0xec   : > { %v639_v52 = vmax.f32 %v493_v48, 0.0 }
  0xed   : > { %v638_v53 = vmax.f32 %v488_v50, 0.0  ;;  %v1108_v54 = vpop.f32.mrb[4].mxu0 }
  0xee   : > { %v503_v55 = vadd.f32 %v1108_v54, %v1387_v40  ;;  %v497_v56 = vpop.f32.mrb[5].mxu0 }
  0xef   : > { %v1394_v57 = vpack.c.bf16 %v639_v52, %v638_v53  ;;  %v498_v58 = vadd.f32 %v1387_v40, %v497_v56 }
  0xf0   : > { %v641_v59 = vmax.f32 %v503_v55, 0.0 }
  0xf1   : > { %v640_v60 = vmax.f32 %v498_v58, 0.0  ;;  %v1111_v61 = vpop.f32.mrb[6].mxu0 }
  0xf2   : > { %v513_v62 = vadd.f32 %v1111_v61, %v1387_v40  ;;  %v507_v63 = vpop.f32.mrb[7].mxu0 }
  0xf3   : > { %v1398_v0 = vpack.c.bf16 %v641_v59, %v640_v60  ;;  %v508_v1 = vadd.f32 %v1387_v40, %v507_v63 }
  0xf4   : > { %v643_v2 = vmax.f32 %v513_v62, 0.0 }
  0xf5   : > { %v642_v3 = vmax.f32 %v508_v1, 0.0  ;;  %v1114_v4 = vpop.f32.mrb[8].mxu0 }
  0xf6   : > { %v523_v5 = vadd.f32 %v1114_v4, %v1387_v40  ;;  %v517_v6 = vpop.f32.mrb[9].mxu0 }
  0xf7   : > { %v1402_v7 = vpack.c.bf16 %v643_v2, %v642_v3  ;;  %v518_v8 = vadd.f32 %v1387_v40, %v517_v6 }
  0xf8   : > { %v645_v9 = vmax.f32 %v523_v5, 0.0 }
  0xf9   : > { %v644_v10 = vmax.f32 %v518_v8, 0.0  ;;  %v1117_v11 = vpop.f32.mrb[10].mxu0 }
  0xfa   : > { %v533_v12 = vadd.f32 %v1117_v11, %v1387_v40  ;;  %v527_v13 = vpop.f32.mrb[11].mxu0 }
  0xfb   : > { %v1406_v14 = vpack.c.bf16 %v645_v9, %v644_v10  ;;  %v528_v15 = vadd.f32 %v1387_v40, %v527_v13 }
  0xfc   : > { %v647_v16 = vmax.f32 %v533_v12, 0.0 }
  0xfd   : > { %v646_v17 = vmax.f32 %v528_v15, 0.0  ;;  %v1120_v18 = vpop.f32.mrb[12].mxu0 }
  0xfe   : > { %v543_v19 = vadd.f32 %v1120_v18, %v1387_v40  ;;  %v537_v20 = vpop.f32.mrb[13].mxu0 }
  0xff   : > { %v1410_v21 = vpack.c.bf16 %v647_v16, %v646_v17  ;;  %v538_v22 = vadd.f32 %v1387_v40, %v537_v20 }
 0x100   : > { %v649_v23 = vmax.f32 %v543_v19, 0.0 }
 0x101   : > { %v648_v24 = vmax.f32 %v538_v22, 0.0  ;;  %v1123_v25 = vpop.f32.mrb[14].mxu0 }
 0x102   : > { %v553_v26 = vadd.f32 %v1123_v25, %v1387_v40  ;;  %v547_v27 = vpop.f32.mrb[15].mxu0 }
 0x103   : > { %v1414_v28 = vpack.c.bf16 %v649_v23, %v648_v24  ;;  %v548_v29 = vadd.f32 %v1387_v40, %v547_v27 }
 0x104   : > { %v651_v30 = vmax.f32 %v553_v26, 0.0 }
 0x105   : > { %v650_v31 = vmax.f32 %v548_v29, 0.0  ;;  %v1126_v32 = vpop.f32.mrb[16].mxu0  ;;  %v738_v29 = vlaneseq }
 0x106   : > { %v563_v33 = vadd.f32 %v1126_v32, %v1387_v40  ;;  %v557_v34 = vpop.f32.mrb[17].mxu0  ;;  %v740_v32 = vstv %s1294_s25 }
 0x107   : > { %v1418_v35 = vpack.c.bf16 %v651_v30, %v650_v31  ;;  %v558_v36 = vadd.f32 %v1387_v40, %v557_v34  ;;  %v739_v30 = vshrl.u32 %v738_v29, 7 }
 0x108   : > { %v653_v37 = vmax.f32 %v563_v33, 0.0 }
 0x109   : > { %v652_v38 = vmax.f32 %v558_v36, 0.0  ;;  %v1129_v41 = vpop.f32.mrb[18].mxu0  ;;  %v745_v33 = vsub.s32 0, %v739_v30  ;;  %vm741_vm2 = vcmp.eq.s32.totalorder %v739_v30, %v740_v32 }
 0x10a   : > { %v573_v42 = vadd.f32 %v1129_v41, %v1387_v40  ;;  %v567_v43 = vpop.f32.mrb[19].mxu0 }
 0x10b   : > { %v568_v44 = vadd.f32 %v1387_v40, %v567_v43  ;;  %v1180_v45 = vpack.c.bf16 %v653_v37, %v652_v38  ;;  %v1245_v38 = vmov (!%p1000_p4), 0.0|0.0   ;;  %v1247_v43 = vmov (!%p1000_p4), 0.0  }
 0x10c   : > { %v655_v46 = vmax.f32 %v573_v42, 0.0  ;;  %1212 = vmatprep.subr.bf16.mxu0 (!%p1000_p4), %v1245_v38  ;;  %v758_v42 = vld [vmem:[%s1487_s3 + $0x18] sm:$0xff] (!%p1000_p4)  ;;  %1156 = vmatprep.mubr.msk.f32.mxu0 (!%p1000_p4), %vm1246_vm4, %v1247_v43 }
 0x10d   : > { %v654_v47 = vmax.f32 %v568_v44, 0.0  ;;  %v1132_v48 = vpop.f32.mrb[20].mxu0  ;;  %1181 = vmatprep.subr.bf16.mxu1 %v1180_v45  ;;  %v845_v44 = vld [vmem:[%s1489_s5] sm:$0xff] (!%p1000_p4)  ;;  %v846_v45 = vld [vmem:[%s1489_s5 + $0x8] sm:$0xff] (!%p1000_p4) }
 0x10e   : > { %v583_v49 = vadd.f32 %v1132_v48, %v1387_v40  ;;  %v577_v50 = vpop.f32.mrb[21].mxu0  ;;  %1183 = vmatpush3.bf16.msra.mxu1 %v1182_v51 }
 0x10f   : > { %v1184_v52 = vpack.c.bf16 %v655_v46, %v654_v47  ;;  %v578_v53 = vadd.f32 %v1387_v40, %v577_v50  ;;  %v1219_v47 = vpack.c.bf16 (!%p1000_p4), %v846_v45, %v845_v44  ;;  %v848_v50 = vld [vmem:[%s1489_s5 + $0x18] sm:$0xff] (!%p1000_p4) }
 0x110   : > { %v657_v54 = vmax.f32 %v583_v49, 0.0  ;;  %v847_v49 = vld [vmem:[%s1489_s5 + $0x10] sm:$0xff] (!%p1000_p4) }
 0x111   : > { %v656_v55 = vmax.f32 %v578_v53, 0.0  ;;  %v1135_v56 = vpop.f32.mrb[22].mxu0  ;;  %1185 = vmatprep.subr.bf16.mxu1 %v1184_v52  ;;  %v1222_v52 = vpack.c.bf16 (!%p1000_p4), %v848_v50, %v847_v49  ;;  %v849_v53 = vld [vmem:[%s1489_s5 + $0x20] sm:$0xff] (!%p1000_p4) }
 0x112   : > { %v593_v58 = vadd.f32 %v1135_v56, %v1387_v40  ;;  %v587_v59 = vpop.f32.mrb[23].mxu0  ;;  %1187 = vmatpush3.bf16.msra.mxu1 %v1394_v57 }
 0x113   : > { %v1188_v60 = vpack.c.bf16 %v657_v54, %v656_v55  ;;  %v588_v61 = vadd.f32 %v1387_v40, %v587_v59  ;;  %v1001_v54 = vld [vmem:[%s1488_s4] ss:$0 sm:$0xff] (!%p1000_p4)  ;;  %v841_v55 = vand.u32 (!%p1000_p4), 127, %v738_v29 }
 0x114   : > { %v659_v62 = vmax.f32 %v593_v58, 0.0 }
 0x115   : > { %v658_v63 = vmax.f32 %v588_v61, 0.0  ;;  %v1138_v1 = vpop.f32.mrb[24].mxu0  ;;  %1189 = vmatprep.subr.bf16.mxu1 %v1188_v60  ;;  %vm842_vm6 = vcmp.ge.s32.totalorder (!%p1000_p4), %v841_v55, 8 }
 0x116   : > { %v603_v51 = vadd.f32 %v1138_v1, %v1387_v40  ;;  %v597_v2 = vpop.f32.mrb[25].mxu0  ;;  %1191 = vmatpush3.bf16.msra.mxu1 %v1398_v0 }
 0x117   : > { %v1192_v3 = vpack.c.bf16 %v659_v62, %v658_v63  ;;  %v598_v4 = vadd.f32 %v1387_v40, %v597_v2  ;;  %v1003_v62 = vld [vmem:[%s1490_s6] ss:$0 sm:$0xff] (!%p1000_p4) }
 0x118   : > { %v661_v5 = vmax.f32 %v603_v51, 0.0 }
 0x119   : > { %v660_v6 = vmax.f32 %v598_v4, 0.0  ;;  %v1141_v8 = vpop.f32.mrb[26].mxu0  ;;  %1193 = vmatprep.subr.bf16.mxu1 %v1192_v3 }
 0x11a   : > { %v613_v57 = vadd.f32 %v1141_v8, %v1387_v40  ;;  %v607_v9 = vpop.f32.mrb[27].mxu0  ;;  %1195 = vmatpush3.bf16.msra.mxu1 %v1402_v7 }
 0x11b   : > { %v1196_v10 = vpack.c.bf16 %v661_v5, %v660_v6  ;;  %v608_v11 = vadd.f32 %v1387_v40, %v607_v9 }
 0x11c   : > { %v663_v12 = vmax.f32 %v613_v57, 0.0 }
 0x11d   : > { %v662_v13 = vmax.f32 %v608_v11, 0.0  ;;  %v1144_v15 = vpop.f32.mrb[28].mxu0  ;;  %1197 = vmatprep.subr.bf16.mxu1 %v1196_v10 }
 0x11e   : > { %v623_v0 = vadd.f32 %v1144_v15, %v1387_v40  ;;  %v617_v16 = vpop.f32.mrb[29].mxu0  ;;  %1199 = vmatpush3.bf16.msra.mxu1 %v1406_v14 }
 0x11f   : > { %v1200_v17 = vpack.c.bf16 %v663_v12, %v662_v13  ;;  %v618_v18 = vadd.f32 %v1387_v40, %v617_v16 }
 0x120   : > { %v665_v19 = vmax.f32 %v623_v0, 0.0 }
 0x121   : > { %v664_v20 = vmax.f32 %v618_v18, 0.0  ;;  %v1147_v22 = vpop.f32.mrb[30].mxu0  ;;  %1201 = vmatprep.subr.bf16.mxu1 %v1200_v17 }
 0x122   : > { %v633_v7 = vadd.f32 %v1147_v22, %v1387_v40  ;;  %v627_v23 = vpop.f32.mrb[31].mxu0  ;;  %1203 = vmatpush3.bf16.msra.mxu1 %v1410_v21 }
 0x123   : > { %v1204_v24 = vpack.c.bf16 %v665_v19, %v664_v20  ;;  %v628_v25 = vadd.f32 %v1387_v40, %v627_v23  ;;  %v742_v40 = vld [vmem:[#allocation2] sm:$0x3] }
 0x124   : > { %v667_v26 = vmax.f32 %v633_v7, 0.0 }
 0x125   : > { %v666_v27 = vmax.f32 %v628_v25, 0.0  ;;  %1205 = vmatprep.subr.bf16.mxu1 %v1204_v24 }
 0x126   : > { %1207 = vmatpush3.bf16.msra.mxu1 %v1414_v28  ;;  %v756_v28 = vld [vmem:[%s1487_s3 + $0x8] sm:$0xff] (!%p1000_p4) }
 0x127   : > { %v1208_v14 = vpack.c.bf16 %v667_v26, %v666_v27 }
 0x129   : > { %1209 = vmatprep.subr.bf16.mxu1 %v1208_v14 }
 0x12a   : > { %1211 = vmatpush3.bf16.msra.mxu1 %v1418_v35  ;;  %v757_v35 = vld [vmem:[%s1487_s3 + $0x10] sm:$0xff] (!%p1000_p4) }
 0x12b   : > { %1218 = vmatprep.subr.bf16.mxu1 (!%p1000_p4), %v1245_v38  ;;  %v1216_v46 = vpack.c.bf16 (!%p1000_p4), %v758_v42, %v757_v35 }
 0x12d   : > { %733 = vmatmul.mubr.f32.vlgmr.msra.gmra.mrb[0].mxu1 %v1244_v39  ;;  %v755_v39 = vld [vmem:[%s1487_s3] sm:$0xff] (!%p1000_p4) }
 0x12e   : > { %v1213_v41 = vpack.c.bf16 (!%p1000_p4), %v756_v28, %v755_v39  ;;  %1169 = vmatprep.mubr.msk.f32.mxu1 (!%p1000_p4), %vm1246_vm4, %v1247_v43  ;;  %1220 = vmatpush3.bf16.msra.mxu1 (!%p1000_p4), %v1219_v47 }
 0x12f   : > { %1221 = vmatprep.subr.bf16.mxu1 (!%p1000_p4), %v1245_v38 }
 0x130   : > { %1214 = vmatpush3.bf16.msra.mxu0 (!%p1000_p4), %v1213_v41 }
 0x131   : > { %1215 = vmatprep.subr.bf16.mxu0 (!%p1000_p4), %v1245_v38 }
 0x132   : > { %1223 = vmatpush3.bf16.msra.mxu1 (!%p1000_p4), %v1222_v52 }
 0x133   : > { %1167 = vmatprep.subr.mxu1 (!%p1000_p4), %v1247_v43 }
 0x134   : > { %1217 = vmatpush3.bf16.msra.mxu0 (!%p1000_p4), %v1216_v46 }
 0x136   : > { %1168 = vmatpush3.msra.mxu1 (!%p1000_p4), %v849_v53 }
 0x200   : > { %v1076_v31 = vpop.f32.mrb[0].mxu1 }
 0x201   : > { %v1077_v21 = vpop.f32.mrb[1].mxu1  ;;  %753 = sbr.rel (%p1000_p4) target bundleno = 959 (0x3bf), region = 52 }
 0x202   : > { %v1078_v34 = vadd.f32 %v1077_v21, %v1076_v31 }
 0x204   : > { %v746_v36 = vrot.slane %v1078_v34, %v745_v33 }
 0x206   : > { %v747_v37 = vsel %vm741_vm2, %v746_v36, %v742_v40 }
 0x207   : > { %749 = vst.msk [vmem:[#allocation2] sm:$0x3] %vm748_vm3, %v747_v37 }
 0x20e   : > { %v754_v48 = vld [vmem:[#allocation2] sm:$0x3] }
 0x20f   : > { %1157 = vmatmul.mubr.msk.f32.vlgmr.msra.gmra.mrb[0].mxu0 %vm766_vm5, %v754_v48 }
 0x2e2   : > { %v836_v56 = vpop.f32.mrb[0].mxu0 }
 0x2e3   : > { %v837_v58 = vadd.f32 %v1001_v54, %v836_v56  ;;  %v1158_v59 = vpop.f32.mrb[1].mxu0 }
 0x2e5   : > { %v843_v60 = vmax.f32 %v837_v58, 0.0 }
 0x2e7   : > { %v844_v61 = vsel %vm842_vm6, %v843_v60, %v837_v58 }
 0x2e8   : > { %1170 = vmatmul.mubr.msk.f32.vlgmr.msra.gmra.mrb[0].mxu1 %vm857_vm7, %v844_v61 }
 0x3bb   : > { %v927_v63 = vpop.f32.mrb[0].mxu1 }
 0x3bc   : > { %v928_v1 = vadd.f32 %v1003_v62, %v927_v63  ;;  %v1171_v51 = vpop.f32.mrb[1].mxu1 }
 0x3be   : > { %931 = vst [vmem:[%s1491_s7] sm:$0x3] %v928_v1 }
 0x3bf PF: > { %s17_s24 = sadd.s32 1, %s1242_s24  }
 0x3c0   : > { %p14_p5 = scmp.ge.s32.totalorder %s17_s24, 4  }
 0x3c2   :  { %16 = sbr.rel (!%p14_p5) target bundleno = 1 (0x1), region = 78 }

</bundles_post_ra>
